<compile_context>
chip_gen: v7x
topology: tpu7x:2x2x1
jax: 0.10.0
libtpu: 0.0.40
codegen_flags: <defaults>
</compile_context>

<pallas_src>
import functools

import jax
import jax.numpy as jnp
from jax.experimental import pallas as pl
from jax.experimental.pallas import tpu as pltpu


def block_matrix_kernel(a_ref, w_ref, wt_ref, w2_ref, w2t_ref, out_ref, *,
                        n, strides):
    """Assemble the (n*strides, n*strides) block adjacency matrix in VMEM.

    a_ref   : (n, n)             diagonal block
    w_ref   : (strides-1, n, n)  +1 off-diagonal blocks
    wt_ref  : (strides-1, n, n)  transposes of w (for the -1 off-diagonal)
    w2_ref  : (n, n)             +2 off-diagonal block
    w2t_ref : (n, n)             its transpose (for the -2 off-diagonal)
    out_ref : (n*strides, n*strides)
    """
    # One full-width, unmasked zero fill of the output (lane-dense store pass).
    out_ref[...] = jnp.zeros_like(out_ref)

    a = a_ref[...]

    # Diagonal blocks: local_adj[i*N:(i+1)*N, i*N:(i+1)*N] = A
    for i in range(strides):
        out_ref[pl.ds(i * n, n), pl.ds(i * n, n)] = a

    # +/-1 off-diagonal blocks:
    #   local_adj[k*N:(k+1)*N, (k+1)*N:(k+2)*N] = W[k]
    #   local_adj[(k+1)*N:(k+2)*N, k*N:(k+1)*N] = W[k].T
    for k in range(strides - 1):
        out_ref[pl.ds(k * n, n), pl.ds((k + 1) * n, n)] = w_ref[k]
        out_ref[pl.ds((k + 1) * n, n), pl.ds(k * n, n)] = wt_ref[k]

    # +/-2 off-diagonal blocks:
    #   local_adj[j*N:(j+1)*N, (j+2)*N:(j+3)*N] = W2
    #   local_adj[(j+2)*N:(j+3)*N, j*N:(j+1)*N] = W2.T
    if strides >= 3:
        w2 = w2_ref[...]
        w2t = w2t_ref[...]
        for j in range(strides - 2):
            out_ref[pl.ds(j * n, n), pl.ds((j + 2) * n, n)] = w2
            out_ref[pl.ds((j + 2) * n, n), pl.ds(j * n, n)] = w2t


def block_matrix(A, weight_cross_time, weight_cross_time2, *, size, strides):
    """Pallas implementation of BlockMatrix.forward().

    A:                  (size, size)
    weight_cross_time:  (strides-1, size, size)
    weight_cross_time2: (size, size)
    Returns local_adj:  (size*strides, size*strides)
    """
    n = size
    assert A.shape == (n, n)
    assert weight_cross_time.shape == (strides - 1, n, n)
    assert weight_cross_time2.shape == (n, n)

    # Transposed views are produced outside the kernel (layout plumbing only),
    # so the kernel body contains no XLU transpose/relayout work.
    w_t = jnp.swapaxes(weight_cross_time, -1, -2)
    w2_t = weight_cross_time2.T

    kernel = functools.partial(block_matrix_kernel, n=n, strides=strides)

    return pl.pallas_call(
        kernel,
        out_shape=jax.ShapeDtypeStruct((n * strides, n * strides), A.dtype),
        in_specs=[pl.BlockSpec(memory_space=pltpu.MemorySpace.VMEM)] * 5,
        out_specs=pl.BlockSpec(memory_space=pltpu.MemorySpace.VMEM),
    )(A, weight_cross_time, w_t, weight_cross_time2, w2_t)


def block_matrix_reference(A, W, W2, *, size, strides):
    """Pure-JAX reference mirroring the PyTorch forward exactly."""
    n = size
    out = jnp.zeros((n * strides, n * strides), A.dtype)
    for i in range(strides):
        out = out.at[i * n:(i + 1) * n, i * n:(i + 1) * n].set(A)
    for k in range(strides - 1):
        out = out.at[k * n:(k + 1) * n, (k + 1) * n:(k + 2) * n].set(W[k])
        out = out.at[(k + 1) * n:(k + 2) * n, k * n:(k + 1) * n].set(W[k].T)
    for j in range(strides - 2):
        out = out.at[j * n:(j + 1) * n, (j + 2) * n:(j + 3) * n].set(W2)
        out = out.at[(j + 2) * n:(j + 3) * n, j * n:(j + 1) * n].set(W2.T)
    return out


if __name__ == "__main__":
    # Small shapes consistent with the module. N is a multiple of 8 and
    # N*strides = 128 so every block boundary is vreg-tile aligned and the
    # output rows are lane-dense.
    size = 32       # N
    strides = 4     # -> local_adj is (128, 128); exercises all three loops

    key = jax.random.PRNGKey(0)
    ka, kw, kw2 = jax.random.split(key, 3)

    A = jax.random.normal(ka, (size, size), dtype=jnp.float32)
    weight_cross_time = jax.random.normal(
        kw, (strides - 1, size, size), dtype=jnp.float32)
    weight_cross_time2 = jax.random.normal(kw2, (size, size), dtype=jnp.float32)

    out = block_matrix(A, weight_cross_time, weight_cross_time2,
                       size=size, strides=strides)
    out = jax.block_until_ready(out)

    ref = block_matrix_reference(A, weight_cross_time, weight_cross_time2,
                                 size=size, strides=strides)
    assert out.shape == (size * strides, size * strides)
    # Pure data movement -> results must match bit-exactly.
    assert bool(jnp.array_equal(out, ref)), "mismatch vs reference"

    print("KERNEL_OK")
</pallas_src>

<mosaic_0001>
module attributes {stable_mosaic.version = 11 : i64} {
  func.func @block_matrix_kernel(%arg0: memref<32x32xf32, #tpu.memory_space<vmem>>, %arg1: memref<3x32x32xf32, #tpu.memory_space<vmem>>, %arg2: memref<3x32x32xf32, #tpu.memory_space<vmem>>, %arg3: memref<32x32xf32, #tpu.memory_space<vmem>>, %arg4: memref<32x32xf32, #tpu.memory_space<vmem>>, %arg5: memref<128x128xf32, #tpu.memory_space<vmem>>) attributes {dimension_semantics = [], scalar_prefetch = 0 : i64, scratch_operands = 0 : i64, tpu.core_type = #tpu.core_type<tc>} {
    %cst = arith.constant 0.000000e+00 : f32
    %0 = vector.broadcast %cst : f32 to vector<128x128xf32>
    %c0 = arith.constant 0 : index
    %c0_0 = arith.constant 0 : index
    %1 = vector.load %arg5[%c0, %c0_0] : memref<128x128xf32, #tpu.memory_space<vmem>>, vector<128x128xf32>
    tpu.vector_store %arg5[%c0, %c0_0], %0 {strides = array<i32>} : memref<128x128xf32, #tpu.memory_space<vmem>>, vector<128x128xf32>,
    %c0_1 = arith.constant 0 : index
    %c0_2 = arith.constant 0 : index
    %2 = vector.load %arg0[%c0_1, %c0_2] : memref<32x32xf32, #tpu.memory_space<vmem>>, vector<32x32xf32>
    %c0_3 = arith.constant 0 : index
    %c0_4 = arith.constant 0 : index
    %3 = vector.load %arg5[%c0_3, %c0_4] : memref<128x128xf32, #tpu.memory_space<vmem>>, vector<32x32xf32>
    tpu.vector_store %arg5[%c0_3, %c0_4], %2 {strides = array<i32>} : memref<128x128xf32, #tpu.memory_space<vmem>>, vector<32x32xf32>,
    %c32 = arith.constant 32 : index
    %c32_5 = arith.constant 32 : index
    %4 = vector.load %arg5[%c32, %c32_5] : memref<128x128xf32, #tpu.memory_space<vmem>>, vector<32x32xf32>
    tpu.vector_store %arg5[%c32, %c32_5], %2 {strides = array<i32>} : memref<128x128xf32, #tpu.memory_space<vmem>>, vector<32x32xf32>,
    %c64 = arith.constant 64 : index
    %c64_6 = arith.constant 64 : index
    %5 = vector.load %arg5[%c64, %c64_6] : memref<128x128xf32, #tpu.memory_space<vmem>>, vector<32x32xf32>
    tpu.vector_store %arg5[%c64, %c64_6], %2 {strides = array<i32>} : memref<128x128xf32, #tpu.memory_space<vmem>>, vector<32x32xf32>,
    %c96 = arith.constant 96 : index
    %c96_7 = arith.constant 96 : index
    %6 = vector.load %arg5[%c96, %c96_7] : memref<128x128xf32, #tpu.memory_space<vmem>>, vector<32x32xf32>
    tpu.vector_store %arg5[%c96, %c96_7], %2 {strides = array<i32>} : memref<128x128xf32, #tpu.memory_space<vmem>>, vector<32x32xf32>,
    %c0_8 = arith.constant 0 : index
    %c0_9 = arith.constant 0 : index
    %c0_10 = arith.constant 0 : index
    %7 = vector.load %arg1[%c0_8, %c0_9, %c0_10] : memref<3x32x32xf32, #tpu.memory_space<vmem>>, vector<1x32x32xf32>
    %8 = vector.shape_cast %7 : vector<1x32x32xf32> to vector<32x32xf32>
    %c0_11 = arith.constant 0 : index
    %c32_12 = arith.constant 32 : index
    %9 = vector.load %arg5[%c0_11, %c32_12] : memref<128x128xf32, #tpu.memory_space<vmem>>, vector<32x32xf32>
    tpu.vector_store %arg5[%c0_11, %c32_12], %8 {strides = array<i32>} : memref<128x128xf32, #tpu.memory_space<vmem>>, vector<32x32xf32>,
    %c0_13 = arith.constant 0 : index
    %c0_14 = arith.constant 0 : index
    %c0_15 = arith.constant 0 : index
    %10 = vector.load %arg2[%c0_13, %c0_14, %c0_15] : memref<3x32x32xf32, #tpu.memory_space<vmem>>, vector<1x32x32xf32>
    %11 = vector.shape_cast %10 : vector<1x32x32xf32> to vector<32x32xf32>
    %c32_16 = arith.constant 32 : index
    %c0_17 = arith.constant 0 : index
    %12 = vector.load %arg5[%c32_16, %c0_17] : memref<128x128xf32, #tpu.memory_space<vmem>>, vector<32x32xf32>
    tpu.vector_store %arg5[%c32_16, %c0_17], %11 {strides = array<i32>} : memref<128x128xf32, #tpu.memory_space<vmem>>, vector<32x32xf32>,
    %c1 = arith.constant 1 : index
    %c0_18 = arith.constant 0 : index
    %c0_19 = arith.constant 0 : index
    %13 = vector.load %arg1[%c1, %c0_18, %c0_19] : memref<3x32x32xf32, #tpu.memory_space<vmem>>, vector<1x32x32xf32>
    %14 = vector.shape_cast %13 : vector<1x32x32xf32> to vector<32x32xf32>
    %c32_20 = arith.constant 32 : index
    %c64_21 = arith.constant 64 : index
    %15 = vector.load %arg5[%c32_20, %c64_21] : memref<128x128xf32, #tpu.memory_space<vmem>>, vector<32x32xf32>
    tpu.vector_store %arg5[%c32_20, %c64_21], %14 {strides = array<i32>} : memref<128x128xf32, #tpu.memory_space<vmem>>, vector<32x32xf32>,
    %c1_22 = arith.constant 1 : index
    %c0_23 = arith.constant 0 : index
    %c0_24 = arith.constant 0 : index
    %16 = vector.load %arg2[%c1_22, %c0_23, %c0_24] : memref<3x32x32xf32, #tpu.memory_space<vmem>>, vector<1x32x32xf32>
    %17 = vector.shape_cast %16 : vector<1x32x32xf32> to vector<32x32xf32>
    %c64_25 = arith.constant 64 : index
    %c32_26 = arith.constant 32 : index
    %18 = vector.load %arg5[%c64_25, %c32_26] : memref<128x128xf32, #tpu.memory_space<vmem>>, vector<32x32xf32>
    tpu.vector_store %arg5[%c64_25, %c32_26], %17 {strides = array<i32>} : memref<128x128xf32, #tpu.memory_space<vmem>>, vector<32x32xf32>,
    %c2 = arith.constant 2 : index
    %c0_27 = arith.constant 0 : index
    %c0_28 = arith.constant 0 : index
    %19 = vector.load %arg1[%c2, %c0_27, %c0_28] : memref<3x32x32xf32, #tpu.memory_space<vmem>>, vector<1x32x32xf32>
    %20 = vector.shape_cast %19 : vector<1x32x32xf32> to vector<32x32xf32>
    %c64_29 = arith.constant 64 : index
    %c96_30 = arith.constant 96 : index
    %21 = vector.load %arg5[%c64_29, %c96_30] : memref<128x128xf32, #tpu.memory_space<vmem>>, vector<32x32xf32>
    tpu.vector_store %arg5[%c64_29, %c96_30], %20 {strides = array<i32>} : memref<128x128xf32, #tpu.memory_space<vmem>>, vector<32x32xf32>,
    %c2_31 = arith.constant 2 : index
    %c0_32 = arith.constant 0 : index
    %c0_33 = arith.constant 0 : index
    %22 = vector.load %arg2[%c2_31, %c0_32, %c0_33] : memref<3x32x32xf32, #tpu.memory_space<vmem>>, vector<1x32x32xf32>
    %23 = vector.shape_cast %22 : vector<1x32x32xf32> to vector<32x32xf32>
    %c96_34 = arith.constant 96 : index
    %c64_35 = arith.constant 64 : index
    %24 = vector.load %arg5[%c96_34, %c64_35] : memref<128x128xf32, #tpu.memory_space<vmem>>, vector<32x32xf32>
    tpu.vector_store %arg5[%c96_34, %c64_35], %23 {strides = array<i32>} : memref<128x128xf32, #tpu.memory_space<vmem>>, vector<32x32xf32>,
    %c0_36 = arith.constant 0 : index
    %c0_37 = arith.constant 0 : index
    %25 = vector.load %arg3[%c0_36, %c0_37] : memref<32x32xf32, #tpu.memory_space<vmem>>, vector<32x32xf32>
    %c0_38 = arith.constant 0 : index
    %c0_39 = arith.constant 0 : index
    %26 = vector.load %arg4[%c0_38, %c0_39] : memref<32x32xf32, #tpu.memory_space<vmem>>, vector<32x32xf32>
    %c0_40 = arith.constant 0 : index
    %c64_41 = arith.constant 64 : index
    %27 = vector.load %arg5[%c0_40, %c64_41] : memref<128x128xf32, #tpu.memory_space<vmem>>, vector<32x32xf32>
    tpu.vector_store %arg5[%c0_40, %c64_41], %25 {strides = array<i32>} : memref<128x128xf32, #tpu.memory_space<vmem>>, vector<32x32xf32>,
    %c64_42 = arith.constant 64 : index
    %c0_43 = arith.constant 0 : index
    %28 = vector.load %arg5[%c64_42, %c0_43] : memref<128x128xf32, #tpu.memory_space<vmem>>, vector<32x32xf32>
    tpu.vector_store %arg5[%c64_42, %c0_43], %26 {strides = array<i32>} : memref<128x128xf32, #tpu.memory_space<vmem>>, vector<32x32xf32>,
    %c32_44 = arith.constant 32 : index
    %c96_45 = arith.constant 96 : index
    %29 = vector.load %arg5[%c32_44, %c96_45] : memref<128x128xf32, #tpu.memory_space<vmem>>, vector<32x32xf32>
    tpu.vector_store %arg5[%c32_44, %c96_45], %25 {strides = array<i32>} : memref<128x128xf32, #tpu.memory_space<vmem>>, vector<32x32xf32>,
    %c96_46 = arith.constant 96 : index
    %c32_47 = arith.constant 32 : index
    %30 = vector.load %arg5[%c96_46, %c32_47] : memref<128x128xf32, #tpu.memory_space<vmem>>, vector<32x32xf32>
    tpu.vector_store %arg5[%c96_46, %c32_47], %26 {strides = array<i32>} : memref<128x128xf32, #tpu.memory_space<vmem>>, vector<32x32xf32>,
    return
  }
}

</mosaic_0001>

<bundles_post_ra>
// kernel: tpu_custom_call.1
= control target key start
LH: loop header
LB: loop body
LE: loop exit
PB: predicated region body
PF: predicated region fallthrough
CT: control target
= control target key end

     0   :  { %10 = vsyncpa [#allocation3], 0  ;;  %s802_s0 = inlined_call_operand.hbm [shape: f32[32,32], index: 0, kind: input, shape index: {}]   ;;  %s803_s1 = inlined_call_operand.hbm [shape: f32[3,32,32], index: 1, kind: input, shape index: {}]   ;;  %s804_s2 = inlined_call_operand.hbm [shape: f32[3,32,32], index: 2, kind: input, shape index: {}]   ;;  %s805_s3 = inlined_call_operand.hbm [shape: f32[32,32], index: 3, kind: input, shape index: {}]   ;;  %s806_s4 = inlined_call_operand.hbm [shape: f32[32,32], index: 4, kind: input, shape index: {}]   ;;  %s807_s5 = inlined_call_operand.hbm [shape: f32[128,128], index: 5, kind: output, shape index: {}]  }
   0x1   :  { %11 = vsyncpa [#allocation6], 0 }
   0x2   :  { %12 = vsyncpa [#allocation9], 0 }
   0x3   :  { %13 = vsyncpa [#allocation4], 0  ;;  %s540_s18 = smov [#allocation5]   ;;  %s541_s20 = smov [#allocation8]  }
   0x4   :  { %s31_s19 = sshll.u32 %s540_s18, 4  ;;  %s55_s21 = sshll.u32 %s541_s20, 4  ;;  %s32_s19 = int_to_ptr.vmem [resolvable:$true] %s31_s19  ;;  %s582_s21 = int_to_ptr.vmem [resolvable:$true] %s55_s21 }
   0x5   :  { %s400_s24 = scalar_lea.hbm %s803_s1, 1536 }
   0x6   :  { %p401_p0 = scmp.ne.s32.totalorder %s803_s1, %s400_s24  ;;  %p404_p1 = scmp.lt.u32.totalorder %s400_s24, %s803_s1 }
   0x8   :  { %p406_p2 = pnand %p404_p1, %p401_p0 }
   0xa   :  { %409 = shalt.err (!%p406_p2)
}
   0xb   :  { %s410_s29 = scalar_lea.vmem %s32_s19, 1536  ;;  %p415_p4 = scmp.lt.s32.totalorder %s32_s19, %s32_s19 }
   0xc   :  { %p411_p3 = scmp.ne.s32.totalorder %s32_s19, %s410_s29  ;;  %p416_p5 = scmp.lt.s32.totalorder %s410_s29, %s410_s29 }
   0xe   :  { %p417_p6 = por %p416_p5, %p415_p4 }
  0x10   :  { %p418_p7 = pnand %p417_p6, %p411_p3 }
  0x12   :  { %421 = shalt.err (!%p418_p7)
}
  0x13   :  { %s542_s30 = smov 128   ;;  %s543_s6 = smov 8  }
  0x14   :  { %37 = dma.hbm_to_vmem [thread:$0]  %s803_s1, 1536, %s32_s19, [#allocation6], %s542_s30, %s542_s30, %s543_s6  }
  0x15   :  { %s422_s11 = scalar_lea.hbm %s805_s3, 512 }
  0x16   :  { %p423_p8 = scmp.ne.s32.totalorder %s805_s3, %s422_s11  ;;  %p426_p9 = scmp.lt.u32.totalorder %s422_s11, %s805_s3 }
  0x18   :  { %p428_p10 = pnand %p426_p9, %p423_p8 }
  0x1a   :  { %431 = shalt.err (!%p428_p10)
}
  0x1b   :  { %s432_s16 = scalar_lea.vmem %s582_s21, 512  ;;  %p437_p12 = scmp.lt.s32.totalorder %s582_s21, %s582_s21 }
  0x1c   :  { %p433_p11 = scmp.ne.s32.totalorder %s582_s21, %s432_s16  ;;  %p438_p13 = scmp.lt.s32.totalorder %s432_s16, %s432_s16 }
  0x1e   :  { %p439_p0 = por %p438_p13, %p437_p12 }
  0x20   :  { %p440_p1 = pnand %p439_p0, %p433_p11 }
  0x22   :  { %443 = shalt.err (!%p440_p1)
}
  0x23   :  { %61 = dma.hbm_to_vmem [thread:$0]  %s805_s3, 512, %s582_s21, [#allocation9], %s542_s30, %s542_s30, %s543_s6  }
  0x24   :  { %s544_s18 = smov [#allocation2]   ;;  %s545_s20 = smov [#allocation7]  }
  0x25   :  { %s19_s19 = sshll.u32 %s544_s18, 4  ;;  %s43_s22 = sshll.u32 %s545_s20, 4  ;;  %s20_s19 = int_to_ptr.vmem [resolvable:$true] %s19_s19  ;;  %s619_s22 = int_to_ptr.vmem [resolvable:$true] %s43_s22 }
  0x26   :  { %s444_s25 = scalar_lea.hbm %s802_s0, 512 }
  0x27   :  { %p445_p2 = scmp.ne.s32.totalorder %s802_s0, %s444_s25  ;;  %p448_p3 = scmp.lt.u32.totalorder %s444_s25, %s802_s0 }
  0x29   :  { %p450_p4 = pnand %p448_p3, %p445_p2 }
  0x2b   :  { %453 = shalt.err (!%p450_p4)
}
  0x2c   :  { %s454_s3 = scalar_lea.vmem %s20_s19, 512  ;;  %p459_p6 = scmp.lt.s32.totalorder %s20_s19, %s20_s19 }
  0x2d   :  { %p455_p5 = scmp.ne.s32.totalorder %s20_s19, %s454_s3  ;;  %p460_p7 = scmp.lt.s32.totalorder %s454_s3, %s454_s3 }
  0x2f   :  { %p461_p8 = por %p460_p7, %p459_p6 }
  0x31   :  { %p462_p9 = pnand %p461_p8, %p455_p5 }
  0x33   :  { %465 = shalt.err (!%p462_p9)
}
  0x34   :  { %25 = dma.hbm_to_vmem [thread:$0]  %s802_s0, 512, %s20_s19, [#allocation3], %s542_s30, %s542_s30, %s543_s6  }
  0x35   :  { %s466_s10 = scalar_lea.hbm %s804_s2, 1536 }
  0x36   :  { %p467_p10 = scmp.ne.s32.totalorder %s804_s2, %s466_s10  ;;  %p470_p11 = scmp.lt.u32.totalorder %s466_s10, %s804_s2 }
  0x38   :  { %p472_p12 = pnand %p470_p11, %p467_p10 }
  0x3a   :  { %475 = shalt.err (!%p472_p12)
}
  0x3b   :  { %s476_s15 = scalar_lea.vmem %s619_s22, 1536  ;;  %p481_p0 = scmp.lt.s32.totalorder %s619_s22, %s619_s22 }
  0x3c   :  { %p477_p13 = scmp.ne.s32.totalorder %s619_s22, %s476_s15  ;;  %p482_p1 = scmp.lt.s32.totalorder %s476_s15, %s476_s15 }
  0x3e   :  { %p483_p2 = por %p482_p1, %p481_p0 }
  0x40   :  { %p484_p3 = pnand %p483_p2, %p477_p13 }
  0x42   :  { %487 = shalt.err (!%p484_p3)
}
  0x43   :  { %49 = dma.hbm_to_vmem [thread:$0]  %s804_s2, 1536, %s619_s22, [#allocation6], %s542_s30, %s542_s30, %s543_s6  }
  0x44   :  { %s546_s1 = smov [#allocation10]   ;;  %s488_s20 = scalar_lea.hbm %s806_s4, 512 }
  0x45   :  { %s67_s17 = sshll.u32 %s546_s1, 4  ;;  %p489_p4 = scmp.ne.s32.totalorder %s806_s4, %s488_s20  ;;  %s68_s17 = int_to_ptr.vmem [resolvable:$true] %s67_s17 }
  0x46   :  { %p492_p5 = scmp.lt.u32.totalorder %s488_s20, %s806_s4 }
  0x48   :  { %p494_p6 = pnand %p492_p5, %p489_p4 }
  0x4a   :  { %497 = shalt.err (!%p494_p6)
}
  0x4b   :  { %s498_s27 = scalar_lea.vmem %s68_s17, 512  ;;  %p503_p8 = scmp.lt.s32.totalorder %s68_s17, %s68_s17 }
  0x4c   :  { %p499_p7 = scmp.ne.s32.totalorder %s68_s17, %s498_s27  ;;  %p504_p9 = scmp.lt.s32.totalorder %s498_s27, %s498_s27 }
  0x4e   :  { %p505_p10 = por %p504_p9, %p503_p8 }
  0x50   :  { %p506_p11 = pnand %p505_p10, %p499_p7 }
  0x52   :  { %509 = shalt.err (!%p506_p11)
}
  0x53   :  { %73 = dma.hbm_to_vmem [thread:$0]  %s806_s4, 512, %s68_s17, [#allocation9], %s542_s30, %s542_s30, %s543_s6  }
  0x54   :  { %532 = dma.done.wait [#allocation3], 512  }
  0x55   :  { %533 = vsyncadd [#allocation3], 4294966784 }
  0x56   :  { %534 = dma.done.wait [#allocation6], 3072  }
  0x57   :  { %535 = vsyncadd [#allocation6], 4294964224 }
  0x58   :  { %536 = dma.done.wait [#allocation9], 1024  }
  0x59   :  { %537 = vsyncadd [#allocation9], 4294966272  ;;  %v547_v0 = vmov 0.0   ;;  %v107_v1 = vld [vmem:[#allocation2 + $0x10] sm:$0xff]  ;;  %v105_v2 = vld [vmem:[#allocation2] sm:$0xff]  ;;  %s548_s4 = smov 32  }
  0x5a   :  { %95 = vst [vmem:[#allocation11 + $0x30] sm:$0xff] %v547_v0  ;;  %89 = vst [vmem:[#allocation11] sm:$0xff] %v547_v0  ;;  %122 = vrot.lane.b32.xlu1 %v107_v1, %s548_s4  ;;  %118 = vrot.lane.b32.xlu0 %v105_v2, %s548_s4  ;;  %v108_v3 = vld [vmem:[#allocation2 + $0x18] sm:$0xff]  ;;  %v106_v4 = vld [vmem:[#allocation2 + $0x8] sm:$0xff]  ;;  %vm109_vm0 = vcmask 261120   ;;  %s549_s28 = smov 64  }
  0x5b   :  { %90 = vst [vmem:[#allocation11 + $0x8] sm:$0xff] %v547_v0  ;;  %91 = vst [vmem:[#allocation11 + $0x10] sm:$0xff] %v547_v0  ;;  %s550_s29 = smov 96   ;;  %v170_v5 = vld [vmem:[#allocation5 + $0x8] sm:$0xff]  ;;  %v169_v6 = vld [vmem:[#allocation5] sm:$0xff]  ;;  %vm130_vm1 = vcmask 523520  }
  0x5c   :  { %92 = vst [vmem:[#allocation11 + $0x18] sm:$0xff] %v547_v0  ;;  %93 = vst [vmem:[#allocation11 + $0x20] sm:$0xff] %v547_v0  ;;  %v228_v7 = vld [vmem:[#allocation7 + $0x28] sm:$0xff]  ;;  %v227_v8 = vld [vmem:[#allocation7 + $0x20] sm:$0xff]  ;;  %vm147_vm2 = vcmask 785920   ;;  %vm164_vm3 = vcmask 1048320  }
  0x5d   :  { %94 = vst [vmem:[#allocation11 + $0x28] sm:$0xff] %v547_v0  ;;  %96 = vst [vmem:[#allocation11 + $0x38] sm:$0xff] %v547_v0  ;;  %v230_v9 = vld [vmem:[#allocation7 + $0x38] sm:$0xff]  ;;  %v229_v10 = vld [vmem:[#allocation7 + $0x30] sm:$0xff]  ;;  %s551_s3 = smov [#allocation11]  }
  0x5e   :  { %97 = vst [vmem:[#allocation11 + $0x40] sm:$0xff] %v547_v0  ;;  %98 = vst [vmem:[#allocation11 + $0x48] sm:$0xff] %v547_v0  ;;  %124 = vrot.lane.b32.xlu1 %v108_v3, %s548_s4  ;;  %120 = vrot.lane.b32.xlu0 %v106_v4, %s548_s4  ;;  %v172_v11 = vld [vmem:[#allocation5 + $0x18] sm:$0xff]  ;;  %v171_v12 = vld [vmem:[#allocation5 + $0x10] sm:$0xff]  ;;  %s374_s21 = sshll.u32 %s551_s3, 4  ;;  %s375_s21 = int_to_ptr.vmem [resolvable:$true] %s374_s21 }
  0x5f   :  { %99 = vst [vmem:[#allocation11 + $0x50] sm:$0xff] %v547_v0  ;;  %100 = vst [vmem:[#allocation11 + $0x58] sm:$0xff] %v547_v0  ;;  %v203_v13 = vld [vmem:[#allocation5 + $0x28] sm:$0xff]  ;;  %v202_v14 = vld [vmem:[#allocation5 + $0x20] sm:$0xff]  ;;  %s510_s7 = scalar_lea.vmem %s375_s21, 2048  ;;  %p515_p13 = scmp.lt.s32.totalorder %s375_s21, %s375_s21 }
  0x60   :  { %101 = vst [vmem:[#allocation11 + $0x60] sm:$0xff] %v547_v0  ;;  %102 = vst [vmem:[#allocation11 + $0x68] sm:$0xff] %v547_v0  ;;  %v205_v15 = vld [vmem:[#allocation5 + $0x38] sm:$0xff]  ;;  %v204_v16 = vld [vmem:[#allocation5 + $0x30] sm:$0xff]  ;;  %p511_p12 = scmp.ne.s32.totalorder %s375_s21, %s510_s7  ;;  %p516_p0 = scmp.lt.s32.totalorder %s510_s7, %s510_s7 }
  0x61   :  { %103 = vst [vmem:[#allocation11 + $0x70] sm:$0xff] %v547_v0  ;;  %104 = vst [vmem:[#allocation11 + $0x78] sm:$0xff] %v547_v0  ;;  %v253_v17 = vld [vmem:[#allocation5 + $0x48] sm:$0xff]  ;;  %v252_v18 = vld [vmem:[#allocation5 + $0x40] sm:$0xff] }
  0x62   :  { %137 = vrot.lane.b32.xlu1 %v106_v4, %s549_s28  ;;  %135 = vrot.lane.b32.xlu0 %v105_v2, %s549_s28  ;;  %111 = vst.msk [vmem:[#allocation11 + $0x8] sm:$0xff] %vm109_vm0, %v106_v4  ;;  %110 = vst.msk [vmem:[#allocation11] sm:$0xff] %vm109_vm0, %v105_v2  ;;  %v255_v19 = vld [vmem:[#allocation5 + $0x58] sm:$0xff]  ;;  %v254_v20 = vld [vmem:[#allocation5 + $0x50] sm:$0xff]  ;;  %p517_p1 = por %p516_p0, %p515_p13 }
  0x63   :  { %112 = vst.msk [vmem:[#allocation11 + $0x10] sm:$0xff] %vm109_vm0, %v107_v1  ;;  %113 = vst.msk [vmem:[#allocation11 + $0x18] sm:$0xff] %vm109_vm0, %v108_v3  ;;  %v278_v21 = vld [vmem:[#allocation7 + $0x48] sm:$0xff]  ;;  %v277_v22 = vld [vmem:[#allocation7 + $0x40] sm:$0xff] }
  0x64   :  { %v280_v23 = vld [vmem:[#allocation7 + $0x58] sm:$0xff]  ;;  %v279_v24 = vld [vmem:[#allocation7 + $0x50] sm:$0xff]  ;;  %v302_v25 = vld [vmem:[#allocation8 + $0x8] sm:$0xff]  ;;  %p518_p2 = pnand %p517_p1, %p511_p12 }
  0x65   :  { %v301_v26 = vld [vmem:[#allocation8] sm:$0xff]  ;;  %v304_v27 = vld [vmem:[#allocation8 + $0x18] sm:$0xff]  ;;  %v303_v28 = vld [vmem:[#allocation8 + $0x10] sm:$0xff] }
  0x66   :  { %141 = vrot.lane.b32.xlu1 %v108_v3, %s549_s28  ;;  %139 = vrot.lane.b32.xlu0 %v107_v1, %s549_s28  ;;  %v715_v29 = vld [vmem:[#allocation10 + $0x8] sm:$0xff]  ;;  %v717_v30 = vld [vmem:[#allocation10] sm:$0xff]  ;;  %v723_v31 = vld [vmem:[#allocation10 + $0x18] sm:$0xff] }
  0x67   :  { %v725_v32 = vld [vmem:[#allocation10 + $0x10] sm:$0xff]  ;;  %v193_v33 = vld [vmem:[#allocation7] sm:$0xff]  ;;  %v194_v37 = vld [vmem:[#allocation7 + $0x8] sm:$0xff] }
  0x68   :  { %v195_v34 = vld [vmem:[#allocation7 + $0x10] sm:$0xff]  ;;  %v196_v38 = vld [vmem:[#allocation7 + $0x18] sm:$0xff] }
  0x6a   :  { %154 = vrot.lane.b32.xlu1 %v106_v4, %s550_s29  ;;  %152 = vrot.lane.b32.xlu0 %v105_v2, %s550_s29 }
  0x6e   :  { %158 = vrot.lane.b32.xlu1 %v108_v3, %s550_s29  ;;  %156 = vrot.lane.b32.xlu0 %v107_v1, %s550_s29 }
  0x72   :  { %179 = vrot.lane.b32.xlu1 %v170_v5, %s548_s4  ;;  %177 = vrot.lane.b32.xlu0 %v169_v6, %s548_s4 }
  0x76   :  { %237 = vrot.lane.b32.xlu1 %v228_v7, %s548_s4  ;;  %235 = vrot.lane.b32.xlu0 %v227_v8, %s548_s4 }
  0x7a   :  { %241 = vrot.lane.b32.xlu1 %v230_v9, %s548_s4  ;;  %239 = vrot.lane.b32.xlu0 %v229_v10, %s548_s4 }
  0x7e   :  { %183 = vrot.lane.b32.xlu1 %v172_v11, %s548_s4  ;;  %181 = vrot.lane.b32.xlu0 %v171_v12, %s548_s4 }
  0x82   :  { %212 = vrot.lane.b32.xlu1 %v203_v13, %s549_s28  ;;  %210 = vrot.lane.b32.xlu0 %v202_v14, %s549_s28 }
  0x86   :  { %216 = vrot.lane.b32.xlu1 %v205_v15, %s549_s28  ;;  %214 = vrot.lane.b32.xlu0 %v204_v16, %s549_s28 }
  0x8a   :  { %262 = vrot.lane.b32.xlu1 %v253_v17, %s550_s29  ;;  %260 = vrot.lane.b32.xlu0 %v252_v18, %s550_s29 }
  0x8e   :  { %266 = vrot.lane.b32.xlu1 %v255_v19, %s550_s29  ;;  %264 = vrot.lane.b32.xlu0 %v254_v20, %s550_s29 }
  0x92   :  { %287 = vrot.lane.b32.xlu1 %v278_v21, %s549_s28  ;;  %285 = vrot.lane.b32.xlu0 %v277_v22, %s549_s28 }
  0x96   :  { %291 = vrot.lane.b32.xlu1 %v280_v23, %s549_s28  ;;  %289 = vrot.lane.b32.xlu0 %v279_v24, %s549_s28 }
  0x9a   :  { %315 = vrot.lane.b32.xlu1 %v302_v25, %s549_s28  ;;  %313 = vrot.lane.b32.xlu0 %v301_v26, %s549_s28 }
  0x9e   :  { %319 = vrot.lane.b32.xlu1 %v304_v27, %s549_s28  ;;  %317 = vrot.lane.b32.xlu0 %v303_v28, %s549_s28 }
  0xa2   :  { %335 = vrot.lane.b32.xlu1 %v302_v25, %s550_s29  ;;  %333 = vrot.lane.b32.xlu0 %v301_v26, %s550_s29 }
  0xa6   :  { %339 = vrot.lane.b32.xlu1 %v304_v27, %s550_s29  ;;  %337 = vrot.lane.b32.xlu0 %v303_v28, %s550_s29 }
  0xaa   :  { %355 = vrot.lane.b32.xlu1 %v715_v29, %s548_s4  ;;  %353 = vrot.lane.b32.xlu0 %v717_v30, %s548_s4 }
  0xae   :  { %359 = vrot.lane.b32.xlu1 %v723_v31, %s548_s4  ;;  %357 = vrot.lane.b32.xlu0 %v725_v32, %s548_s4 }
  0xcc   :  { %v123_v35 = vpop.permute.xlu1 %122  ;;  %v119_v36 = vpop.permute.xlu0 %118 }
  0xcd   :  { %133 = vst.msk [vmem:[#allocation11 + $0x30] sm:$0xff] %vm130_vm1, %v123_v35  ;;  %131 = vst.msk [vmem:[#allocation11 + $0x20] sm:$0xff] %vm130_vm1, %v119_v36 }
  0xce   :  { %197 = vst.msk [vmem:[#allocation11 + $0x20] sm:$0xff] %vm109_vm0, %v193_v33  ;;  %199 = vst.msk [vmem:[#allocation11 + $0x30] sm:$0xff] %vm109_vm0, %v195_v34 }
  0xd0   :  { %v125_v39 = vpop.permute.xlu1 %124  ;;  %v121_v40 = vpop.permute.xlu0 %120 }
  0xd1   :  { %134 = vst.msk [vmem:[#allocation11 + $0x38] sm:$0xff] %vm130_vm1, %v125_v39  ;;  %132 = vst.msk [vmem:[#allocation11 + $0x28] sm:$0xff] %vm130_vm1, %v121_v40 }
  0xd2   :  { %198 = vst.msk [vmem:[#allocation11 + $0x28] sm:$0xff] %vm109_vm0, %v194_v37  ;;  %200 = vst.msk [vmem:[#allocation11 + $0x38] sm:$0xff] %vm109_vm0, %v196_v38 }
  0xd4   :  { %v138_v41 = vpop.permute.xlu1 %137  ;;  %v136_v42 = vpop.permute.xlu0 %135 }
  0xd5   :  { %149 = vst.msk [vmem:[#allocation11 + $0x48] sm:$0xff] %vm147_vm2, %v138_v41  ;;  %148 = vst.msk [vmem:[#allocation11 + $0x40] sm:$0xff] %vm147_vm2, %v136_v42 }
  0xd8   :  { %v142_v43 = vpop.permute.xlu1 %141  ;;  %v140_v44 = vpop.permute.xlu0 %139 }
  0xd9   :  { %151 = vst.msk [vmem:[#allocation11 + $0x58] sm:$0xff] %vm147_vm2, %v142_v43  ;;  %150 = vst.msk [vmem:[#allocation11 + $0x50] sm:$0xff] %vm147_vm2, %v140_v44 }
  0xdc   :  { %v155_v45 = vpop.permute.xlu1 %154  ;;  %v153_v46 = vpop.permute.xlu0 %152 }
  0xdd   :  { %166 = vst.msk [vmem:[#allocation11 + $0x68] sm:$0xff] %vm164_vm3, %v155_v45  ;;  %165 = vst.msk [vmem:[#allocation11 + $0x60] sm:$0xff] %vm164_vm3, %v153_v46 }
  0xe0   :  { %v159_v47 = vpop.permute.xlu1 %158  ;;  %v157_v48 = vpop.permute.xlu0 %156 }
  0xe1   :  { %168 = vst.msk [vmem:[#allocation11 + $0x78] sm:$0xff] %vm164_vm3, %v159_v47  ;;  %167 = vst.msk [vmem:[#allocation11 + $0x70] sm:$0xff] %vm164_vm3, %v157_v48 }
  0xe4   :  { %v180_v49 = vpop.permute.xlu1 %179  ;;  %v178_v50 = vpop.permute.xlu0 %177 }
  0xe5   :  { %190 = vst.msk [vmem:[#allocation11 + $0x8] sm:$0xff] %vm130_vm1, %v180_v49  ;;  %189 = vst.msk [vmem:[#allocation11] sm:$0xff] %vm130_vm1, %v178_v50 }
  0xe8   :  { %v238_v51 = vpop.permute.xlu1 %237  ;;  %v236_v52 = vpop.permute.xlu0 %235 }
  0xe9   :  { %248 = vst.msk [vmem:[#allocation11 + $0x48] sm:$0xff] %vm130_vm1, %v238_v51  ;;  %247 = vst.msk [vmem:[#allocation11 + $0x40] sm:$0xff] %vm130_vm1, %v236_v52 }
  0xec   :  { %v242_v53 = vpop.permute.xlu1 %241  ;;  %v240_v54 = vpop.permute.xlu0 %239 }
  0xed   :  { %250 = vst.msk [vmem:[#allocation11 + $0x58] sm:$0xff] %vm130_vm1, %v242_v53  ;;  %249 = vst.msk [vmem:[#allocation11 + $0x50] sm:$0xff] %vm130_vm1, %v240_v54 }
  0xf0   :  { %v184_v55 = vpop.permute.xlu1 %183  ;;  %v182_v56 = vpop.permute.xlu0 %181 }
  0xf1   :  { %192 = vst.msk [vmem:[#allocation11 + $0x18] sm:$0xff] %vm130_vm1, %v184_v55  ;;  %191 = vst.msk [vmem:[#allocation11 + $0x10] sm:$0xff] %vm130_vm1, %v182_v56 }
  0xf4   :  { %v213_v57 = vpop.permute.xlu1 %212  ;;  %v211_v58 = vpop.permute.xlu0 %210 }
  0xf5   :  { %223 = vst.msk [vmem:[#allocation11 + $0x28] sm:$0xff] %vm147_vm2, %v213_v57  ;;  %222 = vst.msk [vmem:[#allocation11 + $0x20] sm:$0xff] %vm147_vm2, %v211_v58 }
  0xf8   :  { %v217_v59 = vpop.permute.xlu1 %216  ;;  %v215_v60 = vpop.permute.xlu0 %214 }
  0xf9   :  { %225 = vst.msk [vmem:[#allocation11 + $0x38] sm:$0xff] %vm147_vm2, %v217_v59  ;;  %224 = vst.msk [vmem:[#allocation11 + $0x30] sm:$0xff] %vm147_vm2, %v215_v60 }
  0xfc   :  { %v263_v61 = vpop.permute.xlu1 %262  ;;  %v261_v62 = vpop.permute.xlu0 %260 }
  0xfd   :  { %273 = vst.msk [vmem:[#allocation11 + $0x48] sm:$0xff] %vm164_vm3, %v263_v61  ;;  %272 = vst.msk [vmem:[#allocation11 + $0x40] sm:$0xff] %vm164_vm3, %v261_v62 }
  0xfe   :  { %330 = vst.msk [vmem:[#allocation11 + $0x48] sm:$0xff] %vm109_vm0, %v715_v29  ;;  %329 = vst.msk [vmem:[#allocation11 + $0x40] sm:$0xff] %vm109_vm0, %v717_v30 }
 0x100   :  { %v267_v63 = vpop.permute.xlu1 %266  ;;  %v265_v0 = vpop.permute.xlu0 %264 }
 0x101   :  { %275 = vst.msk [vmem:[#allocation11 + $0x58] sm:$0xff] %vm164_vm3, %v267_v63  ;;  %274 = vst.msk [vmem:[#allocation11 + $0x50] sm:$0xff] %vm164_vm3, %v265_v0 }
 0x102   :  { %332 = vst.msk [vmem:[#allocation11 + $0x58] sm:$0xff] %vm109_vm0, %v723_v31  ;;  %331 = vst.msk [vmem:[#allocation11 + $0x50] sm:$0xff] %vm109_vm0, %v725_v32 }
 0x104   :  { %v288_v1 = vpop.permute.xlu1 %287  ;;  %v286_v2 = vpop.permute.xlu0 %285 }
 0x105   :  { %298 = vst.msk [vmem:[#allocation11 + $0x68] sm:$0xff] %vm147_vm2, %v288_v1  ;;  %297 = vst.msk [vmem:[#allocation11 + $0x60] sm:$0xff] %vm147_vm2, %v286_v2 }
 0x108   :  { %v292_v3 = vpop.permute.xlu1 %291  ;;  %v290_v4 = vpop.permute.xlu0 %289 }
 0x109   :  { %300 = vst.msk [vmem:[#allocation11 + $0x78] sm:$0xff] %vm147_vm2, %v292_v3  ;;  %299 = vst.msk [vmem:[#allocation11 + $0x70] sm:$0xff] %vm147_vm2, %v290_v4 }
 0x10c   :  { %v316_v5 = vpop.permute.xlu1 %315  ;;  %v314_v6 = vpop.permute.xlu0 %313 }
 0x10d   :  { %326 = vst.msk [vmem:[#allocation11 + $0x8] sm:$0xff] %vm147_vm2, %v316_v5  ;;  %325 = vst.msk [vmem:[#allocation11] sm:$0xff] %vm147_vm2, %v314_v6 }
 0x110   :  { %v320_v7 = vpop.permute.xlu1 %319  ;;  %v318_v8 = vpop.permute.xlu0 %317 }
 0x111   :  { %328 = vst.msk [vmem:[#allocation11 + $0x18] sm:$0xff] %vm147_vm2, %v320_v7  ;;  %327 = vst.msk [vmem:[#allocation11 + $0x10] sm:$0xff] %vm147_vm2, %v318_v8 }
 0x114   :  { %v336_v9 = vpop.permute.xlu1 %335  ;;  %v334_v10 = vpop.permute.xlu0 %333 }
 0x115   :  { %346 = vst.msk [vmem:[#allocation11 + $0x28] sm:$0xff] %vm164_vm3, %v336_v9  ;;  %345 = vst.msk [vmem:[#allocation11 + $0x20] sm:$0xff] %vm164_vm3, %v334_v10 }
 0x118   :  { %v340_v11 = vpop.permute.xlu1 %339  ;;  %v338_v12 = vpop.permute.xlu0 %337 }
 0x119   :  { %348 = vst.msk [vmem:[#allocation11 + $0x38] sm:$0xff] %vm164_vm3, %v340_v11  ;;  %347 = vst.msk [vmem:[#allocation11 + $0x30] sm:$0xff] %vm164_vm3, %v338_v12 }
 0x11c   :  { %v356_v13 = vpop.permute.xlu1 %355  ;;  %v354_v14 = vpop.permute.xlu0 %353 }
 0x11d   :  { %366 = vst.msk [vmem:[#allocation11 + $0x68] sm:$0xff] %vm130_vm1, %v356_v13  ;;  %365 = vst.msk [vmem:[#allocation11 + $0x60] sm:$0xff] %vm130_vm1, %v354_v14 }
 0x120   :  { %v360_v15 = vpop.permute.xlu1 %359  ;;  %v358_v16 = vpop.permute.xlu0 %357 }
 0x121   :  { %368 = vst.msk [vmem:[#allocation11 + $0x78] sm:$0xff] %vm130_vm1, %v360_v15  ;;  %367 = vst.msk [vmem:[#allocation11 + $0x70] sm:$0xff] %vm130_vm1, %v358_v16 }
 0x122   :  { %521 = shalt.err (!%p518_p2)
}
 0x123   :  { %s522_s10 = scalar_lea.hbm %s807_s5, 2048 }
 0x124   :  { %p523_p3 = scmp.ne.s32.totalorder %s807_s5, %s522_s10  ;;  %p526_p4 = scmp.lt.u32.totalorder %s522_s10, %s807_s5 }
 0x126   :  { %p528_p5 = pnand %p526_p4, %p523_p3 }
 0x128   :  { %531 = shalt.err (!%p528_p5)
}
 0x129   :  { %380 = dma.vmem_to_hbm [thread:$0]  %s375_s21, 2048, %s807_s5, [#allocation4], %s542_s30, %s542_s30, %s543_s6  }
 0x12a   :  { %538 = dma.done.wait [#allocation4], 2048  }
 0x12b   :  { %539 = vsyncadd [#allocation4], 4294965248 }
 0x12c   :  { %384 = vsyncpa [#allocation3], 1 }
 0x12d   :  { %385 = vsyncpa [#allocation6], 1 }
 0x12e   :  { %386 = vsyncpa [#allocation9], 1 }
 0x12f   :  { %387 = vsyncpa [#allocation4], 1 }

</bundles_post_ra>
